<compile_context>
chip_gen: v7x
topology: tpu7x:2x2x1
jax: 0.10.0
libtpu: 0.0.40
codegen_flags: <defaults>
</compile_context>

<pallas_src>
import functools

import jax
import jax.numpy as jnp
from jax.experimental import pallas as pl
from jax.experimental.pallas import tpu as pltpu


def ffn_kernel(x_ref, w1_ref, b1_ref, w2_ref, b2_ref, o_ref, acc_ref, *, tile_h):
    j = pl.program_id(1)

    @pl.when(j == 0)
    def _init():
        acc_ref[...] = jnp.zeros_like(acc_ref)

    # fc1 slice: (tile_m, E) @ (E, tile_h) -> f32 accumulation on the MXU.
    h = jnp.dot(x_ref[...], w1_ref[...], preferred_element_type=jnp.float32)

    # b1 is fully resident in VMEM; slice the (1, tile_h) window for this j step.
    if tile_h % 128 == 0:
        start = pl.multiple_of(j * tile_h, 128)
    else:
        start = j * tile_h
    h = jnp.maximum(h + b1_ref[:, pl.ds(start, tile_h)], 0.0)

    # Dropout(p=0.4): identity in eval/inference mode.
    # fc2 partial: (tile_m, tile_h) @ (tile_h, E), accumulated in f32 VMEM scratch.
    acc_ref[...] += jnp.dot(h.astype(w2_ref.dtype), w2_ref[...],
                            preferred_element_type=jnp.float32)

    @pl.when(j == pl.num_programs(1) - 1)
    def _finalize():
        o_ref[...] = (acc_ref[...] + b2_ref[...]).astype(o_ref.dtype)


def _round_up(x, m):
    return ((x + m - 1) // m) * m


def _pick_divisor_tile(total, target, align):
    """Largest multiple of `align` that divides `total` and is <= target (else `total`)."""
    if total <= target or total <= align:
        return total
    t = (min(target, total) // align) * align
    while t >= align:
        if total % t == 0:
            return t
        t -= align
    return total


def _tpu_chip_info():
    """(vmem_capacity_bytes, num_tensorcores_per_chip, mxu_native_dim)."""
    kind = ""
    try:
        kind = jax.devices()[0].device_kind.lower()
    except Exception:  # pragma: no cover
        pass
    vmem_bytes = None
    try:
        vmem_bytes = int(pltpu.get_tpu_info().vmem_capacity_bytes)
    except Exception:  # pragma: no cover
        pass
    if vmem_bytes is None or vmem_bytes <= 0:
        if "v7" in kind:
            vmem_bytes = 64 << 20
        elif kind:
            vmem_bytes = 128 << 20          # v5e / v6e
        else:
            vmem_bytes = 64 << 20           # unknown: be conservative
    num_tc = 2 if "v7" in kind else 1
    # MXU native tile: 256x256 on v6e/v7x, 128x128 on v5e and older.
    old_gen = any(g in kind for g in ("v2", "v3", "v4", "v5"))
    mxu_dim = 128 if old_gen else 256
    return vmem_bytes, num_tc, mxu_dim


def _maybe_cast(a, dtype):
    dtype = jnp.dtype(dtype)
    return a if a.dtype == dtype else a.astype(dtype)


def prepare_params(w1, b1, w2, b2, compute_dtype=jnp.bfloat16):
    """Cast weights once, outside the per-call hot path (avoids an extra HBM pass over
    W1/W2 on every invocation). Biases stay f32, reshaped to (1, N) row vectors."""
    return (_maybe_cast(w1, compute_dtype),
            _maybe_cast(b1.reshape(1, -1), jnp.float32),
            _maybe_cast(w2, compute_dtype),
            _maybe_cast(b2.reshape(1, -1), jnp.float32))


def feed_forward(x, w1, b1, w2, b2, *, tile_m=None, tile_h=None,
                 compute_dtype=jnp.bfloat16, out_dtype=None):
    """x: (batch, seq, E); w1: (E, 4E); b1: (4E,) or (1,4E); w2: (4E, E); b2: (E,) or (1,E).

    Weights may be passed pre-cast to `compute_dtype` (see prepare_params); casts inside
    this wrapper are no-ops in that case.
    """
    batch, seq, E = x.shape
    H = w1.shape[1]
    M = batch * seq
    out_dtype = jnp.dtype(x.dtype if out_dtype is None else out_dtype)
    compute_dtype = jnp.dtype(compute_dtype)
    cbytes = compute_dtype.itemsize
    out_bytes = out_dtype.itemsize

    vmem_bytes, num_tc, mxu_dim = _tpu_chip_info()

    # ---- M (row) tile: pad M up instead of requiring divisibility ----
    m_sublane = 16 if cbytes == 2 else 8
    m_align = mxu_dim if M >= mxu_dim else m_sublane
    m_target = 512 if num_tc >= 2 else 1024     # v7x: smaller VMEM, 2 TCs; v5e/v6e: go big
    if tile_m is None:
        # On multi-TC chips make sure the "parallel" i axis has >= 2 tiles.
        min_i_tiles = 2 if (num_tc >= 2 and M >= 2 * m_align) else 1
        tile_m = min(m_target, _round_up(-(-M // min_i_tiles), m_align))
        tile_m = max(tile_m, m_sublane)
    tile_m = max(int(tile_m), m_sublane)
    M_pad = _round_up(M, tile_m)

    # ---- hidden (4E) tile: sized from per-generation VMEM budget ----
    h_align = mxu_dim if (H >= mxu_dim and H % mxu_dim == 0) else 128
    if tile_h is None:
        vmem_budget = vmem_bytes * 3 // 4                       # leave compiler headroom
        fixed = (2 * tile_m * E * cbytes                        # x tile, double-buffered
                 + tile_m * E * 4                               # f32 accumulator
                 + 2 * tile_m * E * out_bytes                   # out tile, double-buffered
                 + 2 * (H + E) * 4)                             # resident biases
        per_h = 2 * (2 * E * cbytes) + tile_m * (4 + cbytes)    # w1+w2 slabs + h (f32 + cast)
        avail = max(vmem_budget - fixed, per_h * h_align)
        tile_h = _pick_divisor_tile(H, max(h_align, avail // per_h), h_align)
    tile_h = int(tile_h)
    assert H % tile_h == 0, "hidden (4*embed) must be divisible by tile_h"

    # ---- operand prep (casts are no-ops if params were prepared outside) ----
    x2d = _maybe_cast(x.reshape(M, E), compute_dtype)
    if M_pad != M:
        x2d = jnp.pad(x2d, ((0, M_pad - M), (0, 0)))
    w1c = _maybe_cast(w1, compute_dtype)
    w2c = _maybe_cast(w2, compute_dtype)
    b1_2d = _maybe_cast(b1.reshape(1, H), jnp.float32)
    b2_2d = _maybe_cast(b2.reshape(1, E), jnp.float32)

    grid = (M_pad // tile_m, H // tile_h)
    n_i = grid[0]

    # Advisory cost estimate so XLA schedules surrounding ops sensibly.
    cost = pl.CostEstimate(
        flops=4 * M_pad * E * H,                    # two matmuls
        transcendentals=0,
        bytes_accessed=(M_pad * E * cbytes
                        + n_i * 2 * E * H * cbytes  # W1/W2 re-streamed per i-tile
                        + (H + E) * 4
                        + M_pad * E * out_bytes),
    )

    # VMEM working-set estimate: double-buffered x/w1/w2/out, resident biases,
    # f32 accumulator, and the in-kernel h intermediate (f32 + cast copy).
    vmem_est = (2 * (tile_m * E + E * tile_h + tile_h * E) * cbytes
                + 2 * (H + E) * 4
                + 2 * tile_m * E * out_bytes
                + tile_m * E * 4
                + tile_m * tile_h * (4 + cbytes))
    cap = min(vmem_bytes - (16 << 20), 100 << 20)   # ~48 MiB on v7x, ~100 MiB on v5e/v6e
    vmem_limit = min(max(32 << 20, vmem_est * 3 // 2), max(cap, vmem_est + (4 << 20)))
    vmem_limit = int(min(vmem_limit, vmem_bytes))

    out2d = pl.pallas_call(
        functools.partial(ffn_kernel, tile_h=tile_h),
        out_shape=jax.ShapeDtypeStruct((M_pad, E), out_dtype),
        grid=grid,
        in_specs=[
            pl.BlockSpec((tile_m, E), lambda i, j: (i, 0)),     # x row tile
            pl.BlockSpec((E, tile_h), lambda i, j: (0, j)),     # w1 column slab
            pl.BlockSpec((1, H), lambda i, j: (0, 0)),          # b1 fully resident
            pl.BlockSpec((tile_h, E), lambda i, j: (j, 0)),     # w2 row slab
            pl.BlockSpec((1, E), lambda i, j: (0, 0)),          # b2 (grid-invariant)
        ],
        out_specs=pl.BlockSpec((tile_m, E), lambda i, j: (i, 0)),
        scratch_shapes=[pltpu.VMEM((tile_m, E), jnp.float32)],
        compiler_params=pltpu.CompilerParams(
            dimension_semantics=("parallel", "arbitrary"),
            vmem_limit_bytes=vmem_limit,
        ),
        cost_estimate=cost,
    )(x2d, w1c, b1_2d, w2c, b2_2d)

    if M_pad != M:
        out2d = out2d[:M]
    return out2d.reshape(batch, seq, E)


def init_params(key, embed_size):
    """Deterministic init mimicking nn.Linear's uniform(-1/sqrt(fan_in), 1/sqrt(fan_in))."""
    hidden = embed_size * 4
    k1, k2, k3, k4 = jax.random.split(key, 4)
    bound1 = 1.0 / jnp.sqrt(embed_size)
    bound2 = 1.0 / jnp.sqrt(hidden)
    # stored as (in_features, out_features), i.e. PyTorch weight transposed
    w1 = jax.random.uniform(k1, (embed_size, hidden), jnp.float32, -bound1, bound1)
    b1 = jax.random.uniform(k2, (hidden,), jnp.float32, -bound1, bound1)
    w2 = jax.random.uniform(k3, (hidden, embed_size), jnp.float32, -bound2, bound2)
    b2 = jax.random.uniform(k4, (embed_size,), jnp.float32, -bound2, bound2)
    return w1, b1, w2, b2


if __name__ == "__main__":
    key = jax.random.PRNGKey(0)
    # E = 128 keeps every tile lane-dense (last dim a multiple of 128).
    batch, seq, embed_size = 2, 8, 128

    k_x, k_p = jax.random.split(key)
    x = jax.random.normal(k_x, (batch, seq, embed_size), jnp.float32)
    w1, b1, w2, b2 = init_params(k_p, embed_size)

    M = batch * seq
    H = embed_size * 4
    x2d = x.reshape(M, embed_size)
    hp = jax.lax.Precision.HIGHEST

    # --- f32 path (tile_h=128 exercises the hidden-axis accumulator): exact check ---
    out_f32 = jax.block_until_ready(
        feed_forward(x, w1, b1, w2, b2, tile_h=128, compute_dtype=jnp.float32))
    ref_h = jnp.maximum(jnp.dot(x2d, w1, precision=hp) + b1, 0.0)
    ref_f32 = (jnp.dot(ref_h, w2, precision=hp) + b2).reshape(batch, seq, embed_size)
    assert jnp.allclose(out_f32, ref_f32, atol=1e-4, rtol=1e-4), "f32 mismatch vs reference"

    # --- f32 path with a non-tile-multiple M (exercises the row-padding path) ---
    x_odd = jax.random.normal(jax.random.PRNGKey(1), (1, 5, embed_size), jnp.float32)
    out_odd = jax.block_until_ready(
        feed_forward(x_odd, w1, b1, w2, b2, compute_dtype=jnp.float32))
    ref_h_odd = jnp.maximum(jnp.dot(x_odd.reshape(5, embed_size), w1, precision=hp) + b1, 0.0)
    ref_odd = (jnp.dot(ref_h_odd, w2, precision=hp) + b2).reshape(1, 5, embed_size)
    assert jnp.allclose(out_odd, ref_odd, atol=1e-4, rtol=1e-4), "padded-M mismatch vs reference"

    # --- bf16 path: weights pre-cast once (hoisted casts), check vs matching bf16 ref ---
    w1b, b1b, w2b, b2b = prepare_params(w1, b1, w2, b2, jnp.bfloat16)
    out_bf16 = jax.block_until_ready(feed_forward(x, w1b, b1b, w2b, b2b, tile_h=256))
    xb = x2d.astype(jnp.bfloat16)
    hb = jnp.maximum(
        jnp.dot(xb, w1.astype(jnp.bfloat16), preferred_element_type=jnp.float32) + b1, 0.0)
    ref_bf16 = (jnp.dot(hb.astype(jnp.bfloat16), w2.astype(jnp.bfloat16),
                        preferred_element_type=jnp.float32) + b2
                ).reshape(batch, seq, embed_size)
    assert jnp.allclose(out_bf16, ref_bf16, atol=2e-2, rtol=2e-2), "bf16 mismatch vs reference"

    print("KERNEL_OK")
</pallas_src>

<mosaic_0001>
module attributes {stable_mosaic.version = 11 : i64} {
  func.func @ffn_kernel(%arg0: i32, %arg1: i32, %arg2: memref<16x128xf32, #tpu.memory_space<vmem>>, %arg3: memref<128x128xf32, #tpu.memory_space<vmem>>, %arg4: memref<1x512xf32, #tpu.memory_space<vmem>>, %arg5: memref<128x128xf32, #tpu.memory_space<vmem>>, %arg6: memref<1x128xf32, #tpu.memory_space<vmem>>, %arg7: memref<16x128xf32, #tpu.memory_space<vmem>>, %arg8: memref<16x128xf32, #tpu.memory_space<vmem>>) attributes {dimension_semantics = [#tpu.dimension_semantics<parallel>, #tpu.dimension_semantics<arbitrary>], iteration_bounds = array<i64: 1, 4>, scalar_prefetch = 0 : i64, scratch_operands = 1 : i64, tpu.core_type = #tpu.core_type<tc>, window_params = [{transform_indices = @transform_0, window_bounds = array<i64: 16, 128>}, {transform_indices = @transform_1, window_bounds = array<i64: 128, 128>}, {pipeline_mode = #tpu.pipeline_mode<synchronous>, transform_indices = @transform_2, window_bounds = array<i64: 1, 512>}, {transform_indices = @transform_3, window_bounds = array<i64: 128, 128>}, {pipeline_mode = #tpu.pipeline_mode<synchronous>, transform_indices = @transform_4, window_bounds = array<i64: 1, 128>}, {transform_indices = @transform_5, window_bounds = array<i64: 16, 128>}]} {
    %c0_i32 = arith.constant 0 : i32
    %0 = arith.cmpi eq, %arg1, %c0_i32 : i32
    %1 = arith.extui %0 : i1 to i32
    %c0_i32_0 = arith.constant 0 : i32
    %2 = arith.cmpi ne, %1, %c0_i32_0 : i32
    scf.if %2 {
      %cst_14 = arith.constant 0.000000e+00 : f32
      %22 = vector.broadcast %cst_14 : f32 to vector<16x128xf32>
      %c0_15 = arith.constant 0 : index
      %c0_16 = arith.constant 0 : index
      %23 = vector.load %arg8[%c0_15, %c0_16] : memref<16x128xf32, #tpu.memory_space<vmem>>, vector<16x128xf32>
      tpu.vector_store %arg8[%c0_15, %c0_16], %22 {strides = array<i32>} : memref<16x128xf32, #tpu.memory_space<vmem>>, vector<16x128xf32>,
    } else {
    }
    %c0 = arith.constant 0 : index
    %c0_1 = arith.constant 0 : index
    %3 = vector.load %arg2[%c0, %c0_1] : memref<16x128xf32, #tpu.memory_space<vmem>>, vector<16x128xf32>
    %c0_2 = arith.constant 0 : index
    %c0_3 = arith.constant 0 : index
    %4 = vector.load %arg3[%c0_2, %c0_3] : memref<128x128xf32, #tpu.memory_space<vmem>>, vector<128x128xf32>
    %cst = arith.constant dense<0.000000e+00> : vector<16x128xf32>
    %5 = tpu.matmul %3, %4, %cst {dimension_numbers = #tpu.dot_dimension_numbers<[1], [0], [0], [1], [0, 0, 1, 1], [], []>} : vector<16x128xf32>, vector<128x128xf32>, vector<16x128xf32> -> vector<16x128xf32>
    %c128_i32 = arith.constant 128 : i32
    %6 = arith.muli %arg1, %c128_i32 : i32
    %7 = tpu.assume_multiple %6, 128 : i32
    %c0_4 = arith.constant 0 : index
    %8 = arith.index_cast %7 : i32 to index
    %9 = vector.load %arg4[%c0_4, %8] : memref<1x512xf32, #tpu.memory_space<vmem>>, vector<1x128xf32>
    %10 = vector.broadcast %9 : vector<1x128xf32> to vector<16x128xf32>
    %11 = arith.addf %5, %10 : vector<16x128xf32>
    %cst_5 = arith.constant 0.000000e+00 : f32
    %12 = vector.broadcast %cst_5 : f32 to vector<16x128xf32>
    %13 = arith.maximumf %11, %12 : vector<16x128xf32>
    %c0_6 = arith.constant 0 : index
    %c0_7 = arith.constant 0 : index
    %14 = vector.load %arg8[%c0_6, %c0_7] : memref<16x128xf32, #tpu.memory_space<vmem>>, vector<16x128xf32>
    %c0_8 = arith.constant 0 : index
    %c0_9 = arith.constant 0 : index
    %15 = vector.load %arg5[%c0_8, %c0_9] : memref<128x128xf32, #tpu.memory_space<vmem>>, vector<128x128xf32>
    %cst_10 = arith.constant dense<0.000000e+00> : vector<16x128xf32>
    %16 = tpu.matmul %13, %15, %cst_10 {dimension_numbers = #tpu.dot_dimension_numbers<[1], [0], [0], [1], [0, 0, 1, 1], [], []>} : vector<16x128xf32>, vector<128x128xf32>, vector<16x128xf32> -> vector<16x128xf32>
    %17 = arith.addf %14, %16 : vector<16x128xf32>
    %c0_11 = arith.constant 0 : index
    %c0_12 = arith.constant 0 : index
    %18 = vector.load %arg8[%c0_11, %c0_12] : memref<16x128xf32, #tpu.memory_space<vmem>>, vector<16x128xf32>
    tpu.vector_store %arg8[%c0_11, %c0_12], %17 {strides = array<i32>} : memref<16x128xf32, #tpu.memory_space<vmem>>, vector<16x128xf32>,
    %c3_i32 = arith.constant 3 : i32
    %19 = arith.cmpi eq, %arg1, %c3_i32 : i32
    %20 = arith.extui %19 : i1 to i32
    %c0_i32_13 = arith.constant 0 : i32
    %21 = arith.cmpi ne, %20, %c0_i32_13 : i32
    scf.if %21 {
      %c0_14 = arith.constant 0 : index
      %c0_15 = arith.constant 0 : index
      %22 = vector.load %arg8[%c0_14, %c0_15] : memref<16x128xf32, #tpu.memory_space<vmem>>, vector<16x128xf32>
      %c0_16 = arith.constant 0 : index
      %c0_17 = arith.constant 0 : index
      %23 = vector.load %arg6[%c0_16, %c0_17] : memref<1x128xf32, #tpu.memory_space<vmem>>, vector<1x128xf32>
      %24 = vector.broadcast %23 : vector<1x128xf32> to vector<16x128xf32>
      %25 = arith.addf %22, %24 : vector<16x128xf32>
      %c0_18 = arith.constant 0 : index
      %c0_19 = arith.constant 0 : index
      %26 = vector.load %arg7[%c0_18, %c0_19] : memref<16x128xf32, #tpu.memory_space<vmem>>, vector<16x128xf32>
      tpu.vector_store %arg7[%c0_18, %c0_19], %25 {strides = array<i32>} : memref<16x128xf32, #tpu.memory_space<vmem>>, vector<16x128xf32>,
    } else {
    }
    return
  }
  func.func @transform_0(%arg0: i32, %arg1: i32) -> (i32, i32) {
    %c0_i32 = arith.constant 0 : i32
    %c0_i32_0 = arith.constant 0 : i32
    return %arg0, %c0_i32 : i32, i32
  }
  func.func @transform_1(%arg0: i32, %arg1: i32) -> (i32, i32) {
    %c0_i32 = arith.constant 0 : i32
    %c0_i32_0 = arith.constant 0 : i32
    return %c0_i32, %arg1 : i32, i32
  }
  func.func @transform_2(%arg0: i32, %arg1: i32) -> (i32, i32) {
    %c0_i32 = arith.constant 0 : i32
    %c0_i32_0 = arith.constant 0 : i32
    %c0_i32_1 = arith.constant 0 : i32
    return %c0_i32, %c0_i32_0 : i32, i32
  }
  func.func @transform_3(%arg0: i32, %arg1: i32) -> (i32, i32) {
    %c0_i32 = arith.constant 0 : i32
    %c0_i32_0 = arith.constant 0 : i32
    return %arg1, %c0_i32 : i32, i32
  }
  func.func @transform_4(%arg0: i32, %arg1: i32) -> (i32, i32) {
    %c0_i32 = arith.constant 0 : i32
    %c0_i32_0 = arith.constant 0 : i32
    %c0_i32_1 = arith.constant 0 : i32
    return %c0_i32, %c0_i32_0 : i32, i32
  }
  func.func @transform_5(%arg0: i32, %arg1: i32) -> (i32, i32) {
    %c0_i32 = arith.constant 0 : i32
    %c0_i32_0 = arith.constant 0 : i32
    return %arg0, %c0_i32 : i32, i32
  }
}

</mosaic_0001>

<bundles_post_ra>
// kernel: tpu_custom_call.1
= control target key start
LH: loop header
LB: loop body
LE: loop exit
PB: predicated region body
PF: predicated region fallthrough
CT: control target
= control target key end

     0   :  { %10 = vsyncpa [#allocation4], 0  ;;  %s1417_s0 = inlined_call_operand.hbm [shape: f32[16,128], index: 0, kind: input, shape index: {}]   ;;  %s1418_s1 = inlined_call_operand.hbm [shape: f32[128,512], index: 1, kind: input, shape index: {}]   ;;  %s1419_s2 = inlined_call_operand.vmem [shape: f32[1,512], index: 2, kind: input, shape index: {}]   ;;  %s1420_s3 = inlined_call_operand.hbm [shape: f32[512,128], index: 3, kind: input, shape index: {}]   ;;  %s1421_s4 = inlined_call_operand.vmem [shape: f32[1,128], index: 4, kind: input, shape index: {}]   ;;  %s1422_s5 = inlined_call_operand.hbm [shape: f32[16,128], index: 5, kind: output, shape index: {}]  }
   0x1   :  { %11 = vsyncpa [#allocation7], 0 }
   0x2   :  { %13 = vsyncpa [#allocation7 + $0x1], 0 }
   0x3   :  { %14 = vsyncpa [#allocation5], 0  ;;  %s1135_s18 = smov 0   ;;  %s1137_s19 = smov 0  }
   0x4   :  { %s1139_s20 = smov 0   ;;  %s1141_s21 = smov 0  }
   0x5   :  { %s1143_s22 = smov 0   ;;  %s1145_s23 = smov 0  }
   0x6 LB: > { %s29_s24 = sadd.s32 1, %s1089_s22  ;;  %s65_s25 = sadd.s32 1, %s1081_s20  ;;  %s1093_s23 = sphi %s1145_s23, %s20_s23   ;;  %s1089_s22 = sphi %s1143_s22, %s1439_s22   ;;  %s1085_s21 = sphi %s1141_s21, %s1438_s21   ;;  %s1081_s20 = sphi %s1139_s20, %s1437_s20   ;;  %s1077_s19 = sphi %s1137_s19, %s1436_s19   ;;  %s1073_s18 = sphi %s1135_s18, %s1435_s18  }
   0x7   : > { %p30_p0 = scmp.ge.s32.totalorder %s29_s24, 4  ;;  %p72_p1 = scmp.ne.s32.totalorder %s1081_s20, %s1077_s19 }
   0x8   : > { %p73_p2 = scmp.eq.s32.totalorder %s1093_s23, 0  ;;  %p861_p5 = scmp.lt.s32.totalorder %s1093_s23, 4 }
   0x9   : > { %s1441_s24 = smov (%p30_p0, %s29_s24), 0  ;;  %s218_s28 = sand.u32 1, %s1093_s23  }
   0xa   : > { %p1172_p3 = por %p73_p2, %p72_p1  ;;  %s62_s27 = ssub.s32 %s1089_s22, %s1441_s24 }
   0xb   : > { %p63_p4 = scmp.eq.s32.totalorder %s62_s27, 0  ;;  %s220_s29 = sand.u32 1, %s1081_s20  }
   0xc   : > { %s1184_s6 = sshll.u32 %s220_s29, 7  ;;  %s649_s7 = sshll.u32 %s1089_s22, 7 }
   0xd   : > { %s1182_s30 = scalar_select %p63_p4, %s1081_s20, %s65_s25  }
   0xe   : > { %s1190_s10 = scalar_lea.hbm %s1418_s1, %s649_s7  ;;  %s222_s11 = scalar_lea.vmem [#allocation6], %s1184_s6 }
   0xf   : > { %s228_s12 = sshll.u32 %s222_s11, 4  ;;  %p1197_p6 = pnand %p861_p5, %p1172_p3  ;;  %s1193_s12 = int_to_ptr.vmem [resolvable:$true] %s228_s12 }
  0x10   : > { %s1201_s14 = scalar_lea.sflag [#allocation7], %s218_s28  ;;  %s921_s15 = scalar_lea.hbm %s1190_s10, 2048 }
  0x11   : > { %p922_p7 = scmp.ne.s32.totalorder %s1190_s10, %s921_s15  ;;  %p923_p8 = pneg %p1197_p6 }
  0x12   : > { %s926_s25 = scalar_lea.hbm %s1418_s1, 8192  ;;  %p927_p11 = scmp.lt.u32.totalorder %s1190_s10, %s1418_s1 }
  0x13   : > { %p924_p9 = pnand %p923_p8, %p922_p7  ;;  %p928_p12 = scmp.lt.u32.totalorder %s926_s25, %s921_s15 }
  0x14   : > { %p930_p0 = scmp.lt.u32.totalorder %s921_s15, %s1190_s10 }
  0x15   : > { %p925_p10 = pneg %p924_p9  ;;  %p929_p13 = por %p928_p12, %p927_p11 }
  0x17   : > { %p931_p1 = por %p930_p0, %p929_p13 }
  0x19   : > { %p932_p2 = pnand %p931_p1, %p925_p10 }
  0x1b   : > { %935 = shalt.err (!%p932_p2)
}
  0x1c   : > { %s936_s28 = scalar_lea.vmem %s1193_s12, 2048  ;;  %s1095_s29 = smov [#allocation6]  }
  0x1d   : > { %p937_p3 = scmp.ne.s32.totalorder %s1193_s12, %s936_s28  ;;  %s941_s7 = sshll.u32 %s1095_s29, 4  ;;  %s942_s7 = int_to_ptr.vmem [resolvable:$false] %s941_s7 }
  0x1e   : > { %s943_s8 = scalar_lea.vmem %s942_s7, 4096  ;;  %p944_p7 = scmp.lt.s32.totalorder %s1193_s12, %s942_s7 }
  0x1f   : > { %p939_p4 = pnand %p937_p3, %p923_p8  ;;  %p945_p9 = scmp.lt.s32.totalorder %s943_s8, %s936_s28 }
  0x21   : > { %p940_p5 = pneg %p939_p4  ;;  %p946_p11 = por %p945_p9, %p944_p7 }
  0x23   : > { %p947_p12 = pnand %p946_p11, %p940_p5 }
  0x25   : > { %950 = shalt.err (!%p947_p12)
}
  0x26   : > { %s1096_s9 = smov 512   ;;  %s1097_s11 = smov 128  }
  0x27   : > { %s1098_s15 = smov 8   ;;  %s1232_s16 = sadd.s32 4294967295, %s1093_s23  }
  0x28   : > { %856 = dma.hbm_to_vmem [thread:$0]  (!%p1197_p6), %s1190_s10, 2048, %s1193_s12, %s1201_s14, %s1096_s9, %s1097_s11, %s1098_s15  }
  0x29   : > { %p78_p10 = scmp.ne.s32.totalorder %s1077_s19, %s1073_s18  ;;  %p1423_p13 = scmp.eq.s32.totalorder %s1232_s16, 0 }
  0x2a   : > { %p645_p0 = scmp.ge.s32.totalorder %s1093_s23, 1  ;;  %p183_p1 = scmp.lt.s32.totalorder %s1093_s23, 5 }
  0x2b   : > { %p1241_p2 = por %p1423_p13, %p78_p10  ;;  %s1099_s10 = smov [#allocation3]  }
  0x2c   : > { %p1245_p3 = pnand %p645_p0, %p183_p1  ;;  %s198_s12 = sshll.u32 %s1099_s10, 4  ;;  %s1249_s12 = int_to_ptr.vmem [resolvable:$true] %s198_s12 }
  0x2d   : > { %s1428_s17 = scalar_select %p1241_p2, 1, 0 }
  0x2e   : > { %s1429_s25 = scalar_select %p1245_p3, 1, 0 }
  0x2f   : > { %p849_p4 = pneg %p1245_p3  ;;  %s666_s18 = sshll.u32 %s1089_s22, 11 }
  0x30   : > { %s1257_s28 = scalar_lea.hbm %s1420_s3, %s666_s18  ;;  %s242_s29 = scalar_lea.vmem [#allocation8], %s1184_s6 }
  0x31   : > { %s249_s7 = sshll.u32 %s242_s29, 4  ;;  %p1262_p5 = pnand %p849_p4, %p1423_p13  ;;  %s1266_s7 = int_to_ptr.vmem [resolvable:$true] %s249_s7 }
  0x32   : > { %s951_s9 = scalar_lea.hbm %s1257_s28, 2048  ;;  %s956_s26 = scalar_lea.hbm %s1420_s3, 8192 }
  0x33   : > { %p952_p7 = scmp.ne.s32.totalorder %s1257_s28, %s951_s9  ;;  %p957_p12 = scmp.lt.u32.totalorder %s1257_s28, %s1420_s3 }
  0x34   : > { %p958_p10 = scmp.lt.u32.totalorder %s956_s26, %s951_s9  ;;  %p960_p1 = scmp.lt.u32.totalorder %s951_s9, %s1257_s28 }
  0x35   : > { %p954_p9 = pnand %p952_p7, %p923_p8 }
  0x36   : > { %p959_p0 = por %p958_p10, %p957_p12 }
  0x37   : > { %p955_p11 = pneg %p954_p9 }
  0x38   : > { %p961_p4 = por %p960_p1, %p959_p0 }
  0x3a   : > { %p962_p13 = pnand %p961_p4, %p955_p11 }
  0x3c   : > { %965 = shalt.err (!%p962_p13)
}
  0x3d   : > { %s966_s29 = scalar_lea.vmem %s1266_s7, 2048  ;;  %s1100_s10 = smov [#allocation8]  }
  0x3e   : > { %p967_p7 = scmp.ne.s32.totalorder %s1266_s7, %s966_s29  ;;  %s971_s18 = sshll.u32 %s1100_s10, 4  ;;  %s972_s18 = int_to_ptr.vmem [resolvable:$false] %s971_s18 }
  0x3f   : > { %s973_s27 = scalar_lea.vmem %s972_s18, 4096  ;;  %p974_p3 = scmp.lt.s32.totalorder %s1266_s7, %s972_s18 }
  0x40   : > { %p969_p9 = pnand %p967_p7, %p923_p8  ;;  %p975_p12 = scmp.lt.s32.totalorder %s973_s27, %s966_s29 }
  0x42   : > { %p970_p2 = pneg %p969_p9  ;;  %p976_p10 = por %p975_p12, %p974_p3 }
  0x44   : > { %p977_p0 = pnand %p976_p10, %p970_p2 }
  0x46   : > { %980 = shalt.err (!%p977_p0)
}
  0x47   : > { %859 = dma.hbm_to_vmem [thread:$0]  (!%p1197_p6), %s1257_s28, 2048, %s1266_s7, %s1201_s14, %s1097_s11, %s1097_s11, %s1098_s15  }
  0x48   : > { %s981_s6 = scalar_lea.hbm %s1417_s0, 256  ;;  %p983_p13 = pneg %p1262_p5 }
  0x49   : > { %p982_p8 = scmp.ne.s32.totalorder %s1417_s0, %s981_s6  ;;  %p988_p11 = scmp.lt.u32.totalorder %s981_s6, %s1417_s0 }
  0x4b   : > { %p984_p2 = pnand %p983_p13, %p982_p8 }
  0x4d   : > { %p985_p3 = pneg %p984_p2 }
  0x4f   : > { %p990_p1 = pnand %p988_p11, %p985_p3 }
  0x51   : > { %993 = shalt.err (!%p990_p1)
}
  0x52   : > { %s994_s14 = scalar_lea.vmem %s1249_s12, 256  ;;  %p1002_p9 = scmp.lt.s32.totalorder %s1249_s12, %s1249_s12 }
  0x53   : > { %p995_p6 = scmp.ne.s32.totalorder %s1249_s12, %s994_s14  ;;  %p1003_p12 = scmp.lt.s32.totalorder %s994_s14, %s994_s14 }
  0x55   : > { %p997_p4 = pnand %p995_p6, %p983_p13  ;;  %p1004_p10 = por %p1003_p12, %p1002_p9 }
  0x57   : > { %p998_p7 = pneg %p997_p4 }
  0x59   : > { %p1005_p0 = pnand %p1004_p10, %p998_p7 }
  0x5b   : > { %1008 = shalt.err (!%p1005_p0)
}
  0x5c   : > { %852 = dma.hbm_to_vmem [thread:$0]  (!%p1262_p5), %s1417_s0, 256, %s1249_s12, [#allocation4], %s1097_s11, %s1097_s11, %s1098_s15  }
  0x5d   : > { %p1431_p8 = scmp.ne.s32.totalorder %s1429_s25, 0 }
  0x5e   : > { %p1432_p13 = scmp.eq.s32.totalorder (!%p1431_p8), %s1232_s16, 0 }
  0x5f   : > { %261 = sbr.rel (%p1431_p8) target bundleno = 622 (0x26e), region = 40 }
  0x66   : > { %1060 = dma.done.wait (%p1432_p13), [#allocation4], 256   ;;  %p1433_p2 = pmov %p1432_p13 }
  0x67   : > { %s267_s8 = sand.u32 1, %s1232_s16   ;;  %s269_s27 = sand.u32 1, %s1077_s19  }
  0x68   : > { %1062 = vsyncadd (%p1433_p2), [#allocation4], 4294967040  ;;  %s655_s9 = sshll.u32 %s269_s27, 7  ;;  %s268_s26 = scalar_lea.sflag [#allocation7], %s267_s8 }
  0x69   : > { %s1327_s6 = scalar_lea.vmem [#allocation6], %s655_s9  ;;  %p1434_p3 = scmp.ne.s32.totalorder %s1428_s17, 0 }
  0x6b   : > { %1064 = dma.done.wait (%p1434_p3), %s268_s26, 4096  }
  0x6c   : > { %1066 = vsyncadd (%p1434_p3), %s268_s26, 4294963200  ;;  %s1333_s11 = scalar_lea.vmem [#allocation8], %s655_s9  ;;  %p657_p5 = scmp.ne.s32.totalorder %s1085_s21, 0 }
  0x6d   : > { %v1101_v0 = vmov (!%p657_p5), 0.0  }
  0x6e   : > { %313 = sbr.rel (%p657_p5) target bundleno = 117 (0x75), region = 56  ;;  %314 = vst [vmem:[#allocation2] sm:$0xff] (!%p657_p5), %v1101_v0  ;;  %315 = vst [vmem:[#allocation2 + $0x8] sm:$0xff] (!%p657_p5), %v1101_v0 }
  0x75 PF: > { %v318_v1 = vld [vmem:[%s1327_s6] sm:$0xff]  ;;  %v319_v2 = vld [vmem:[%s1327_s6 + $0x8] sm:$0xff]  ;;  %v320_v3 = vld [vmem:[%s1327_s6 + $0x10] sm:$0xff]  ;;  %s658_s15 = sshll.u32 %s1085_s21, 7  ;;  %p660_p11 = scmp.ne.s32.totalorder %s1085_s21, 3 }
  0x76   : > { %v773_v4 = vpack.c.bf16 %v319_v2, %v318_v1  ;;  %v321_v5 = vld [vmem:[%s1327_s6 + $0x18] sm:$0xff]  ;;  %v322_v7 = vld [vmem:[%s1327_s6 + $0x20] sm:$0xff]  ;;  %v323_v8 = vld [vmem:[%s1327_s6 + $0x28] sm:$0xff]  ;;  %s335_s17 = sshra.s32 %s658_s15, 7 }
  0x77   : > { %v777_v6 = vpack.c.bf16 %v321_v5, %v320_v3  ;;  %v781_v9 = vpack.c.bf16 %v323_v8, %v322_v7  ;;  %v324_v10 = vld [vmem:[%s1327_s6 + $0x30] sm:$0xff]  ;;  %v325_v11 = vld [vmem:[%s1327_s6 + $0x38] sm:$0xff]  ;;  %v424_v13 = vld [vmem:[%s1333_s11] sm:$0xff]  ;;  %s337_s10 = scalar_lea.vmem %s1419_s2, %s335_s17 }
  0x78   : > { %774 = vmatprep.subr.bf16.mxu0 %v773_v4  ;;  %v316_v12 = vld [vmem:[#allocation3] sm:$0xff]  ;;  %v425_v14 = vld [vmem:[%s1333_s11 + $0x8] sm:$0xff]  ;;  %v427_v17 = vld [vmem:[%s1333_s11 + $0x18] sm:$0xff]  ;;  %v785_v21 = vpack.c.bf16 %v325_v11, %v324_v10 }
  0x79   : > { %776 = vmatpush3.bf16.msra.mxu0 %v773_v4  ;;  %735 = vmatprep.mubr.f32.mxu0 %v316_v12  ;;  %v426_v15 = vld [vmem:[%s1333_s11 + $0x10] sm:$0xff]  ;;  %v805_v16 = vpack.c.bf16 %v425_v14, %v424_v13  ;;  %v428_v19 = vld [vmem:[%s1333_s11 + $0x20] sm:$0xff]  ;;  %v429_v20 = vld [vmem:[%s1333_s11 + $0x28] sm:$0xff] }
  0x7a   : > { %778 = vmatprep.subr.bf16.mxu0 %v777_v6  ;;  %v809_v18 = vpack.c.bf16 %v427_v17, %v426_v15  ;;  %v326_v22 = vld [vmem:[%s1327_s6 + $0x40] sm:$0xff]  ;;  %v327_v23 = vld [vmem:[%s1327_s6 + $0x48] sm:$0xff]  ;;  %v813_v24 = vpack.c.bf16 %v429_v20, %v428_v19  ;;  %v430_v25 = vld [vmem:[%s1333_s11 + $0x30] sm:$0xff] }
  0x7b   : > { %806 = vmatprep.subr.bf16.mxu1 %v805_v16  ;;  %v431_v26 = vld [vmem:[%s1333_s11 + $0x38] sm:$0xff]  ;;  %v789_v27 = vpack.c.bf16 %v327_v23, %v326_v22  ;;  %v328_v28 = vld [vmem:[%s1327_s6 + $0x50] sm:$0xff]  ;;  %v432_v31 = vld [vmem:[%s1333_s11 + $0x40] sm:$0xff] }
  0x7c   : > { %808 = vmatpush3.bf16.msra.mxu1 %v805_v16  ;;  %v329_v29 = vld [vmem:[%s1327_s6 + $0x58] sm:$0xff]  ;;  %v817_v30 = vpack.c.bf16 %v431_v26, %v430_v25  ;;  %v433_v32 = vld [vmem:[%s1333_s11 + $0x48] sm:$0xff]  ;;  %v330_v34 = vld [vmem:[%s1327_s6 + $0x60] sm:$0xff] }
  0x7d   : > { %780 = vmatpush3.bf16.msra.mxu0 %v777_v6  ;;  %810 = vmatprep.subr.bf16.mxu1 %v809_v18  ;;  %v793_v33 = vpack.c.bf16 %v329_v29, %v328_v28  ;;  %v331_v35 = vld [vmem:[%s1327_s6 + $0x68] sm:$0xff]  ;;  %v821_v36 = vpack.c.bf16 %v433_v32, %v432_v31  ;;  %v434_v37 = vld [vmem:[%s1333_s11 + $0x50] sm:$0xff]  ;;  %v435_v38 = vld [vmem:[%s1333_s11 + $0x58] sm:$0xff] }
  0x7e   : > { %782 = vmatprep.subr.bf16.mxu0 %v781_v9  ;;  %v797_v39 = vpack.c.bf16 %v331_v35, %v330_v34  ;;  %v332_v40 = vld [vmem:[%s1327_s6 + $0x70] sm:$0xff]  ;;  %v333_v41 = vld [vmem:[%s1327_s6 + $0x78] sm:$0xff]  ;;  %v825_v42 = vpack.c.bf16 %v435_v38, %v434_v37  ;;  %v436_v43 = vld [vmem:[%s1333_s11 + $0x60] sm:$0xff] }
  0x7f   : > { %v437_v44 = vld [vmem:[%s1333_s11 + $0x68] sm:$0xff]  ;;  %v801_v45 = vpack.c.bf16 %v333_v41, %v332_v40  ;;  %v317_v47 = vld [vmem:[#allocation3 + $0x8] sm:$0xff]  ;;  %v438_v48 = vld [vmem:[%s1333_s11 + $0x70] sm:$0xff] }
  0x80   : > { %812 = vmatpush3.bf16.msra.mxu1 %v809_v18  ;;  %v829_v46 = vpack.c.bf16 %v437_v44, %v436_v43  ;;  %v439_v49 = vld [vmem:[%s1333_s11 + $0x78] sm:$0xff]  ;;  %v659_v51 = vld [vmem:[%s337_s10] ss:$0 sm:$0xff]  ;;  %v423_v58 = vld [vmem:[#allocation2 + $0x8] sm:$0xff] }
  0x81   : > { %784 = vmatpush3.bf16.msra.mxu0 %v781_v9  ;;  %814 = vmatprep.subr.bf16.mxu1 %v813_v24  ;;  %v833_v50 = vpack.c.bf16 %v439_v49, %v438_v48  ;;  %v422_v59 = vld [vmem:[#allocation2] sm:$0xff] }
  0x82   : > { %786 = vmatprep.subr.bf16.mxu0 %v785_v21  ;;  %v661_v1 = vld [vmem:[%s1421_s4] ss:$0 sm:$0xff] (!%p660_p11) }
  0x84   : > { %816 = vmatpush3.bf16.msra.mxu1 %v813_v24 }
  0x85   : > { %788 = vmatpush3.bf16.msra.mxu0 %v785_v21  ;;  %818 = vmatprep.subr.bf16.mxu1 %v817_v30 }
  0x86   : > { %790 = vmatprep.subr.bf16.mxu0 %v789_v27 }
  0x88   : > { %820 = vmatpush3.bf16.msra.mxu1 %v817_v30 }
  0x89   : > { %792 = vmatpush3.bf16.msra.mxu0 %v789_v27  ;;  %822 = vmatprep.subr.bf16.mxu1 %v821_v36 }
  0x8a   : > { %794 = vmatprep.subr.bf16.mxu0 %v793_v33 }
  0x8c   : > { %824 = vmatpush3.bf16.msra.mxu1 %v821_v36 }
  0x8d   : > { %796 = vmatpush3.bf16.msra.mxu0 %v793_v33  ;;  %826 = vmatprep.subr.bf16.mxu1 %v825_v42 }
  0x8e   : > { %798 = vmatprep.subr.bf16.mxu0 %v797_v39 }
  0x90   : > { %828 = vmatpush3.bf16.msra.mxu1 %v825_v42 }
  0x91   : > { %800 = vmatpush3.bf16.msra.mxu0 %v797_v39  ;;  %830 = vmatprep.subr.bf16.mxu1 %v829_v46 }
  0x92   : > { %802 = vmatprep.subr.bf16.mxu0 %v801_v45 }
  0x94   : > { %832 = vmatpush3.bf16.msra.mxu1 %v829_v46 }
  0x95   : > { %804 = vmatpush3.bf16.msra.mxu0 %v801_v45  ;;  %834 = vmatprep.subr.bf16.mxu1 %v833_v50 }
  0x98   : > { %736 = vmatmul.mubr.f32.vlgmr.msra.gmra.mrb[0].mxu0 %v317_v47  ;;  %836 = vmatpush3.bf16.msra.mxu1 %v833_v50 }
 0x16b   : > { %v737_v52 = vpop.f32.mrb[0].mxu0 }
 0x16c   : > { %v417_v53 = vadd.f32 %v737_v52, %v659_v51  ;;  %v411_v54 = vpop.f32.mrb[1].mxu0 }
 0x16d   : > { %v412_v55 = vadd.f32 %v659_v51, %v411_v54 }
 0x16e   : > { %v421_v57 = vmax.f32 %v417_v53, 0.0 }
 0x16f   : > { %v420_v56 = vmax.f32 %v412_v55, 0.0 }
 0x171   : > { %770 = vmatprep.mubr.f32.mxu1 %v420_v56 }
 0x172   : > { %771 = vmatmul.mubr.f32.vlgmr.msra.gmra.mrb[0].mxu1 %v421_v57 }
 0x243   : > { %522 = sbr.rel (%p660_p11) target bundleno = 596 (0x254), region = 60 }
 0x245   : > { %v772_v60 = vpop.f32.mrb[0].mxu1 }
 0x246   : > { %v516_v61 = vadd.f32 %v772_v60, %v423_v58  ;;  %v506_v62 = vpop.f32.mrb[1].mxu1 }
 0x247   : > { %v515_v63 = vadd.f32 %v506_v62, %v422_v59 }
 0x248   : > { %518 = vst [vmem:[#allocation2 + $0x8] sm:$0xff] %v516_v61 }
 0x249   : > { %517 = vst [vmem:[#allocation2] sm:$0xff] %v515_v63 }
 0x24f   : > { %v524_v2 = vld [vmem:[#allocation2 + $0x8] sm:$0xff] }
 0x250   : > { %v523_v0 = vld [vmem:[#allocation2] sm:$0xff]  ;;  %v533_v4 = vadd.f32 %v661_v1, %v524_v2 }
 0x251   : > { %v532_v3 = vadd.f32 %v661_v1, %v523_v0 }
 0x252   : > { %535 = vst [vmem:[#allocation9 + $0x8] sm:$0xff] %v533_v4 }
 0x253   : > { %534 = vst [vmem:[#allocation9] sm:$0xff] %v532_v3 }
 0x254 PF: > { %p863_p1 = scmp.eq.s32.totalorder %s1232_s16, 3  ;;  %s1102_s29 = smov [#allocation9]  }
 0x255   : > { %s545_s14 = sshll.u32 %s1102_s29, 4  ;;  %s546_s14 = int_to_ptr.vmem [resolvable:$true] %s545_s14 }
 0x256   : > { %s1009_s28 = scalar_lea.vmem %s546_s14, 256  ;;  %p1016_p9 = scmp.lt.s32.totalorder %s546_s14, %s546_s14 }
 0x257   : > { %p1010_p6 = scmp.ne.s32.totalorder %s546_s14, %s1009_s28  ;;  %p1017_p12 = scmp.lt.s32.totalorder %s1009_s28, %s1009_s28 }
 0x259   : > { %p1011_p4 = pnand %p1010_p6, %p863_p1  ;;  %p1018_p10 = por %p1017_p12, %p1016_p9 }
 0x25b   : > { %p1012_p7 = pneg %p1011_p4 }
 0x25d   : > { %p1019_p0 = pnand %p1018_p10, %p1012_p7 }
 0x25f   : > { %1022 = shalt.err (!%p1019_p0)
}
 0x260   : > { %s1023_s8 = scalar_lea.hbm %s1422_s5, 256 }
 0x261   : > { %p1024_p8 = scmp.ne.s32.totalorder %s1422_s5, %s1023_s8  ;;  %p1029_p3 = scmp.lt.u32.totalorder %s1023_s8, %s1422_s5 }
 0x263   : > { %p1025_p13 = pnand %p1024_p8, %p863_p1 }
 0x265   : > { %p1026_p2 = pneg %p1025_p13 }
 0x267   : > { %p1031_p5 = pnand %p1029_p3, %p1026_p2 }
 0x269   : > { %1034 = shalt.err (!%p1031_p5)
}
 0x26a   : > { %s1103_s11 = smov 128   ;;  %s1104_s15 = smov 8  }
 0x26b   : > { %846 = dma.vmem_to_hbm [thread:$0]  (%p863_p1), %s546_s14, 256, %s1422_s5, [#allocation5], %s1103_s11, %s1103_s11, %s1104_s15  }
 0x26c   : > { %1068 = dma.done.wait (%p863_p1), [#allocation5], 256  }
 0x26d   : > { %1070 = vsyncadd (%p863_p1), [#allocation5], 4294967040 }
 0x26e PF: > { %s20_s23 = sadd.s32 1, %s1093_s23   ;;  %s1435_s18 = smov %s1077_s19 }
 0x26f   : > { %p17_p11 = scmp.ge.s32.totalorder %s20_s23, 6   ;;  %s1436_s19 = smov %s1081_s20 }
 0x270   : > { %s1437_s20 = smov %s1182_s30  ;;  %s1438_s21 = smov %s1089_s22 }
 0x271   : > { %s1439_s22 = smov %s1441_s24  ;;  %19 = sbr.rel (!%p17_p11) target bundleno = 6 (0x6), region = 104 }
 0x278   :  { %561 = vsyncpa [#allocation4], 1 }
 0x279   :  { %563 = vsyncpa [#allocation4 + $0x1], 1 }
 0x27a   :  { %564 = vsyncpa [#allocation7], 1 }
 0x27b   :  { %566 = vsyncpa [#allocation7 + $0x1], 1 }
 0x27c   :  { %567 = vsyncpa [#allocation5], 1 }
 0x27d   :  { %569 = vsyncpa [#allocation5 + $0x1], 1 }

</bundles_post_ra>
